<compile_context>
chip_gen: v7x
topology: tpu7x:2x2x1
jax: 0.10.0
libtpu: 0.0.40
codegen_flags: <defaults>
</compile_context>

<pallas_src>
import functools
import math

import jax
import jax.numpy as jnp
from jax import lax
from jax.experimental import pallas as pl
from jax.experimental.pallas import tpu as pltpu

HIDDEN = 1000        # nn.Linear(in_channels, 1000) hidden width from the module
HIDDEN_PAD = 1024    # zero-padded to a multiple of 128 lanes


# --------------------------------------------------------------------------- #
# Kernel
# --------------------------------------------------------------------------- #
def channel_attention_kernel(x_ref, w1_ref, w2_ref, o_ref, *, inv_hw):
    # x_ref : (bt_g, G, HW_pad)   G = group*C rows per batch-group (multiple of 8)
    # w1_ref: (G, group*HIDDEN_PAD)  block-diag of fc[0].weight.T (zero-padded)
    # w2_ref: (G, group*HIDDEN_PAD)  block-diag of fc[2].weight   (zero-padded)
    # o_ref : (bt_g, G, HW_pad)

    # Global average pool over spatial positions (lane-axis reduction -> XLU).
    # HW padding columns are zero, so sum * (1/HW_real) == true mean.
    pooled = jnp.sum(x_ref[...], axis=-1) * inv_hw              # (bt_g, G) f32

    # fc: Linear -> ReLU -> Linear -> Sigmoid (bias=False), applied per batch
    # element via the block-diagonal weights (no cross-batch mixing).
    h = jnp.dot(pooled, w1_ref[...],
                preferred_element_type=jnp.float32)              # (bt_g, group*HP)
    h = jnp.maximum(h, 0.0)
    logits = lax.dot_general(
        h, w2_ref[...],
        dimension_numbers=(((1,), (1,)), ((), ())),
        preferred_element_type=jnp.float32)                      # (bt_g, G)
    y = jax.nn.sigmoid(logits)                                   # EUP logistic

    # Channel-wise scaling, broadcast over the spatial (lane) axis.
    # Fresh read of x_ref here: don't hold the multi-MiB tile value across the
    # FC chain (VMEM re-loads are cheap and off the HBM critical path).
    o_ref[...] = x_ref[...] * y[:, :, None]


# --------------------------------------------------------------------------- #
# Parameter packing (hoist out of the per-call path — do once at load time)
# --------------------------------------------------------------------------- #
def _fold_factor(B, C):
    """Number of consecutive batch elements folded into the sublane axis so
    that group*C is (ideally) a multiple of 8.  Falls back to smaller powers of
    two if B is not divisible by the ideal factor."""
    group = 8 // math.gcd(C, 8)
    while group > 1 and B % group != 0:
        group //= 2
    return group


def pack_params(w1, w2, group):
    """w1: fc[0].weight (HIDDEN, C); w2: fc[2].weight (C, HIDDEN).
    Returns lane-dense, zero-padded, block-diagonal kernel weights of shape
    (group*C, group*HIDDEN_PAD).  Zero padding is exact: ReLU(0)=0 and zero
    rows/columns contribute nothing."""
    C = w1.shape[1]
    assert w1.shape == (HIDDEN, C) and w2.shape == (C, HIDDEN)
    w1p = jnp.zeros((C, HIDDEN_PAD), w1.dtype).at[:, :HIDDEN].set(w1.T)
    w2p = jnp.zeros((C, HIDDEN_PAD), w2.dtype).at[:, :HIDDEN].set(w2)
    eye = jnp.eye(group, dtype=w1.dtype)
    return jnp.kron(eye, w1p), jnp.kron(eye, w2p)


# --------------------------------------------------------------------------- #
# Tiling policy
# --------------------------------------------------------------------------- #
def _tpu_knobs():
    try:
        kind = jax.devices()[0].device_kind.lower()
    except Exception:
        kind = ""
    is_v7 = "v7" in kind
    return dict(
        # v7x HBM is ~3.2 TB/s -> larger tiles keep the fixed ~0.35us/step
        # overhead small; v5e/v6e are near roofline already at ~4 MiB tiles.
        target_tile_bytes=(6 << 20) if is_v7 else (4 << 20),
        # Never request all of v7x's 64 MiB physical VMEM; leave Mosaic headroom.
        vmem_cap_bytes=(48 << 20) if is_v7 else (64 << 20),
        # Only v7x has 2 TensorCores per chip; v5e/v6e gain nothing from
        # splitting the grid, so no forced minimum step count there.
        prefer_even_steps=is_v7,
    )


def _choose_block_groups(n_groups, bytes_per_group, target_tile_bytes,
                         prefer_even_steps):
    """Batch-groups per grid step: largest divisor of n_groups whose tile fits
    the target budget; on v7x prefer an even number of grid steps so the two
    TensorCores stay balanced."""
    divisors = [d for d in range(1, n_groups + 1) if n_groups % d == 0]
    fitting = [d for d in divisors if d * bytes_per_group <= target_tile_bytes]
    bg = max(fitting) if fitting else 1
    # TODO(synk): if even a single group's (G, HW_pad) slab exceeds the budget
    # (large DFANet stages on v7x's 64 MiB VMEM), split HW across an extra
    # 'arbitrary' grid axis (pool-accumulate pass + rescale pass) or hold the
    # resident tile in bf16.
    if prefer_even_steps and n_groups >= 2:
        even = [d for d in (fitting or divisors) if (n_groups // d) % 2 == 0]
        if even:
            bg = max(even)
    return bg


# --------------------------------------------------------------------------- #
# Wrapper
# --------------------------------------------------------------------------- #
@functools.partial(jax.jit, static_argnames=("group",))
def channel_attention_packed(x_nchw, w1_blk, w2_blk, *, group):
    """x_nchw: (B, C, H, W) float32; w1_blk/w2_blk from pack_params(..., group)."""
    B, C, H, W = x_nchw.shape
    assert B % group == 0
    G = group * C
    assert w1_blk.shape == (G, group * HIDDEN_PAD)
    assert w2_blk.shape == (G, group * HIDDEN_PAD)

    HW = H * W
    HW_pad = ((HW + 127) // 128) * 128          # lane-dense output stores
    itemsize = x_nchw.dtype.itemsize

    x3 = x_nchw.reshape(B, C, HW)
    if HW_pad != HW:
        x3 = jnp.pad(x3, ((0, 0), (0, 0), (0, HW_pad - HW)))
    n_groups = B // group
    xg = x3.reshape(n_groups, G, HW_pad)        # sublane-dense layout

    knobs = _tpu_knobs()
    bytes_per_group = G * HW_pad * itemsize
    bg = _choose_block_groups(n_groups, bytes_per_group,
                              knobs["target_tile_bytes"],
                              knobs["prefer_even_steps"])
    steps = n_groups // bg

    # VMEM budget: double-buffered input + output tiles, two double-buffered
    # resident weights, plus headroom; capped per chip generation.
    tile_bytes = bg * bytes_per_group
    w_bytes = 2 * G * group * HIDDEN_PAD * 4
    vmem_need = 4 * tile_bytes + 2 * w_bytes + (2 << 20)
    vmem_limit = int(min(knobs["vmem_cap_bytes"], max(32 << 20, vmem_need)))

    # Advisory: this kernel is HBM-bound on one read + one write of x.
    cost = pl.CostEstimate(
        flops=int(4 * B * C * group * HIDDEN_PAD + 2 * B * C * HW_pad),
        transcendentals=int(B * C),
        bytes_accessed=int(2 * B * C * HW_pad * itemsize + 2 * w_bytes),
    )

    kernel = functools.partial(channel_attention_kernel, inv_hw=1.0 / HW)

    out_g = pl.pallas_call(
        kernel,
        out_shape=jax.ShapeDtypeStruct((n_groups, G, HW_pad), x3.dtype),
        grid_spec=pltpu.PrefetchScalarGridSpec(
            num_scalar_prefetch=0,
            grid=(steps,),
            in_specs=[
                pl.BlockSpec((bg, G, HW_pad), lambda i: (i, 0, 0)),
                # Constant index maps: weights are DMA'd once and stay resident.
                pl.BlockSpec((G, group * HIDDEN_PAD), lambda i: (0, 0)),
                pl.BlockSpec((G, group * HIDDEN_PAD), lambda i: (0, 0)),
            ],
            out_specs=pl.BlockSpec((bg, G, HW_pad), lambda i: (i, 0, 0)),
        ),
        compiler_params=pltpu.CompilerParams(
            dimension_semantics=("parallel",),
            vmem_limit_bytes=vmem_limit,
        ),
        cost_estimate=cost,
    )(xg, w1_blk, w2_blk)

    out = out_g.reshape(B, C, HW_pad)
    if HW_pad != HW:
        out = out[:, :, :HW]
    return out.reshape(B, C, H, W)


def channel_attention(x_nchw, w1, w2):
    """Convenience wrapper taking raw PyTorch-layout weights (packs per call;
    in a real model call pack_params once at parameter-load time instead)."""
    group = _fold_factor(x_nchw.shape[0], x_nchw.shape[1])
    w1_blk, w2_blk = pack_params(w1, w2, group)
    return channel_attention_packed(x_nchw, w1_blk, w2_blk, group=group)


# --------------------------------------------------------------------------- #
# Pure-JAX reference (matches the PyTorch forward, bias=False Linears)
# --------------------------------------------------------------------------- #
def reference(x_nchw, w1, w2):
    pooled = jnp.mean(x_nchw, axis=(2, 3))                  # (B, C)
    h = jnp.maximum(pooled @ w1.T, 0.0)                     # (B, HIDDEN)
    y = jax.nn.sigmoid(h @ w2.T)                            # (B, C)
    return x_nchw * y[:, :, None, None]


if __name__ == "__main__":
    B, C, H, W = 2, 4, 16, 16          # in_channels == out_channels == C
    key = jax.random.PRNGKey(0)
    kx, k1, k2 = jax.random.split(key, 3)

    x = jax.random.normal(kx, (B, C, H, W), dtype=jnp.float32)
    # Deterministic synthetic parameters in PyTorch layouts (bias=False module).
    w1 = jax.random.normal(k1, (HIDDEN, C), dtype=jnp.float32) * 0.05   # fc[0].weight
    w2 = jax.random.normal(k2, (C, HIDDEN), dtype=jnp.float32) * 0.05   # fc[2].weight

    # One-time parameter packing, hoisted out of the per-call path.
    group = _fold_factor(B, C)
    w1_blk, w2_blk = jax.block_until_ready(pack_params(w1, w2, group))

    out = channel_attention_packed(x, w1_blk, w2_blk, group=group)
    out = jax.block_until_ready(out)

    ref = reference(x, w1, w2)
    assert out.shape == (B, C, H, W)
    err = float(jnp.max(jnp.abs(out - ref)))
    assert jnp.allclose(out, ref, atol=1e-5, rtol=1e-5), err

    print("KERNEL_OK")
</pallas_src>

<mosaic_0001>
module attributes {stable_mosaic.version = 11 : i64} {
  func.func @channel_attention_kernel(%arg0: i32, %arg1: memref<1x8x256xf32, #tpu.memory_space<vmem>>, %arg2: memref<8x2048xf32, #tpu.memory_space<vmem>>, %arg3: memref<8x2048xf32, #tpu.memory_space<vmem>>, %arg4: memref<1x8x256xf32, #tpu.memory_space<vmem>>) attributes {dimension_semantics = [#tpu.dimension_semantics<parallel>], iteration_bounds = array<i64: 1>, scalar_prefetch = 0 : i64, scratch_operands = 0 : i64, tpu.core_type = #tpu.core_type<tc>, window_params = [{transform_indices = @transform_0, window_bounds = array<i64: 1, 8, 256>}, {pipeline_mode = #tpu.pipeline_mode<synchronous>, transform_indices = @transform_1, window_bounds = array<i64: 8, 2048>}, {pipeline_mode = #tpu.pipeline_mode<synchronous>, transform_indices = @transform_2, window_bounds = array<i64: 8, 2048>}, {transform_indices = @transform_3, window_bounds = array<i64: 1, 8, 256>}]} {
    %c0 = arith.constant 0 : index
    %c0_0 = arith.constant 0 : index
    %c0_1 = arith.constant 0 : index
    %0 = vector.load %arg1[%c0, %c0_0, %c0_1] : memref<1x8x256xf32, #tpu.memory_space<vmem>>, vector<1x8x256xf32>
    %cst = arith.constant dense<0.000000e+00> : vector<1x8xf32>
    %1 = vector.multi_reduction <add>, %0, %cst [2] : vector<1x8x256xf32> to vector<1x8xf32>
    %cst_2 = arith.constant 3.906250e-03 : f32
    %2 = vector.broadcast %cst_2 : f32 to vector<1x8xf32>
    %3 = arith.mulf %1, %2 : vector<1x8xf32>
    %c0_3 = arith.constant 0 : index
    %c0_4 = arith.constant 0 : index
    %4 = vector.load %arg2[%c0_3, %c0_4] : memref<8x2048xf32, #tpu.memory_space<vmem>>, vector<8x2048xf32>
    %cst_5 = arith.constant dense<0.000000e+00> : vector<1x2048xf32>
    %5 = tpu.matmul %3, %4, %cst_5 {dimension_numbers = #tpu.dot_dimension_numbers<[1], [0], [0], [1], [0, 0, 1, 1], [], []>} : vector<1x8xf32>, vector<8x2048xf32>, vector<1x2048xf32> -> vector<1x2048xf32>
    %cst_6 = arith.constant 0.000000e+00 : f32
    %6 = vector.broadcast %cst_6 : f32 to vector<1x2048xf32>
    %7 = arith.maximumf %5, %6 : vector<1x2048xf32>
    %c0_7 = arith.constant 0 : index
    %c0_8 = arith.constant 0 : index
    %8 = vector.load %arg3[%c0_7, %c0_8] : memref<8x2048xf32, #tpu.memory_space<vmem>>, vector<8x2048xf32>
    %cst_9 = arith.constant dense<0.000000e+00> : vector<1x8xf32>
    %9 = tpu.matmul %7, %8, %cst_9 {dimension_numbers = #tpu.dot_dimension_numbers<[1], [1], [0], [0], [0, 0, 1, 0], [], []>} : vector<1x2048xf32>, vector<8x2048xf32>, vector<1x8xf32> -> vector<1x8xf32>
    %10 = arith.negf %9 : vector<1x8xf32>
    %11 = math.exp %10 : vector<1x8xf32>
    %cst_10 = arith.constant 1.000000e+00 : f32
    %12 = vector.broadcast %cst_10 : f32 to vector<1x8xf32>
    %13 = arith.addf %12, %11 : vector<1x8xf32>
    %14 = arith.divf %12, %13 : vector<1x8xf32>
    %c0_11 = arith.constant 0 : index
    %c0_12 = arith.constant 0 : index
    %c0_13 = arith.constant 0 : index
    %15 = vector.load %arg1[%c0_11, %c0_12, %c0_13] : memref<1x8x256xf32, #tpu.memory_space<vmem>>, vector<1x8x256xf32>
    %16 = vector.shape_cast %14 : vector<1x8xf32> to vector<1x8x1xf32>
    %17 = vector.broadcast %16 : vector<1x8x1xf32> to vector<1x8x256xf32>
    %18 = arith.mulf %15, %17 : vector<1x8x256xf32>
    %c0_14 = arith.constant 0 : index
    %c0_15 = arith.constant 0 : index
    %c0_16 = arith.constant 0 : index
    %19 = vector.load %arg4[%c0_14, %c0_15, %c0_16] : memref<1x8x256xf32, #tpu.memory_space<vmem>>, vector<1x8x256xf32>
    tpu.vector_store %arg4[%c0_14, %c0_15, %c0_16], %18 {strides = array<i32>} : memref<1x8x256xf32, #tpu.memory_space<vmem>>, vector<1x8x256xf32>,
    return
  }
  func.func @transform_0(%arg0: i32) -> (i32, i32, i32) {
    %c0_i32 = arith.constant 0 : i32
    %c0_i32_0 = arith.constant 0 : i32
    %c0_i32_1 = arith.constant 0 : i32
    return %arg0, %c0_i32, %c0_i32_0 : i32, i32, i32
  }
  func.func @transform_1(%arg0: i32) -> (i32, i32) {
    %c0_i32 = arith.constant 0 : i32
    %c0_i32_0 = arith.constant 0 : i32
    %c0_i32_1 = arith.constant 0 : i32
    return %c0_i32, %c0_i32_0 : i32, i32
  }
  func.func @transform_2(%arg0: i32) -> (i32, i32) {
    %c0_i32 = arith.constant 0 : i32
    %c0_i32_0 = arith.constant 0 : i32
    %c0_i32_1 = arith.constant 0 : i32
    return %c0_i32, %c0_i32_0 : i32, i32
  }
  func.func @transform_3(%arg0: i32) -> (i32, i32, i32) {
    %c0_i32 = arith.constant 0 : i32
    %c0_i32_0 = arith.constant 0 : i32
    %c0_i32_1 = arith.constant 0 : i32
    return %arg0, %c0_i32, %c0_i32_0 : i32, i32, i32
  }
}

</mosaic_0001>

<bundles_post_ra>
// kernel: channel_attention_packed.1
= control target key start
LH: loop header
LB: loop body
LE: loop exit
PB: predicated region body
PF: predicated region fallthrough
CT: control target
= control target key end

     0   :  { %8 = vsyncpa [#allocation3], 0  ;;  %s1292_s12 = smov [#allocation2]   ;;  %s1409_s0 = inlined_call_operand.vmem [shape: f32[1,8,256], index: 0, kind: input, shape index: {}]   ;;  %s1410_s1 = inlined_call_operand.vmem [shape: f32[8,2048], index: 1, kind: input, shape index: {}]   ;;  %s1411_s2 = inlined_call_operand.hbm [shape: f32[8,2048], index: 2, kind: input, shape index: {}]   ;;  %s1412_s3 = inlined_call_operand.vmem [shape: f32[1,8,256], index: 3, kind: output, shape index: {}]  }
   0x1   :  { %s19_s13 = sshll.u32 %s1292_s12, 4  ;;  %s1268_s16 = scalar_lea.hbm %s1411_s2, 2048  ;;  %s20_s13 = int_to_ptr.vmem [resolvable:$true] %s19_s13 }
   0x2   :  { %p1269_p0 = scmp.ne.s32.totalorder %s1411_s2, %s1268_s16  ;;  %p1272_p1 = scmp.lt.u32.totalorder %s1268_s16, %s1411_s2 }
   0x4   :  { %p1274_p2 = pnand %p1272_p1, %p1269_p0 }
   0x6   :  { %1277 = shalt.err (!%p1274_p2)
}
   0x7   :  { %s1278_s21 = scalar_lea.vmem %s20_s13, 2048  ;;  %p1283_p4 = scmp.lt.s32.totalorder %s20_s13, %s20_s13 }
   0x8   :  { %p1279_p3 = scmp.ne.s32.totalorder %s20_s13, %s1278_s21  ;;  %p1284_p5 = scmp.lt.s32.totalorder %s1278_s21, %s1278_s21 }
   0xa   :  { %p1285_p6 = por %p1284_p5, %p1283_p4 }
   0xc   :  { %p1286_p7 = pnand %p1285_p6, %p1279_p3 }
   0xe   :  { %1289 = shalt.err (!%p1286_p7)
}
   0xf   :  { %22 = dma.hbm_to_vmem [thread:$0]  %s1411_s2, 2048, %s20_s13, [#allocation3]  }
  0x10   :  { %1290 = dma.done.wait [#allocation3], 2048  }
  0x11   :  { %1291 = vsyncadd [#allocation3], 4294965248  ;;  %v1329_v0 = vld [vmem:[%s1409_s0] sm:$0xff]  ;;  %v1334_v1 = vld [vmem:[%s1409_s0 + $0x8] sm:$0xff]  ;;  %v1293_v8 = vmov 0.0   ;;  %v49_v9 = vlaneseq  ;;  %vm55_vm0 = vcmask 64512  }
  0x12   :  { %v28_v2 = vadd.f32 %v1334_v1, %v1329_v0  ;;  %v33_v3 = vld [vmem:[%s1410_s1 + $0x8] sm:$0xff]  ;;  %v32_v5 = vld [vmem:[%s1410_s1] sm:$0xff]  ;;  %v35_v6 = vld [vmem:[%s1410_s1 + $0x18] sm:$0xff]  ;;  %122 = vmatprep.mubr.f32.mxu1 %v1293_v8  ;;  %548 = vmatprep.mubr.f32.mxu0 %v1293_v8 }
  0x13   :  { %v45_v4 = vld [vmem:[%s1410_s1 + $0x68] sm:$0xff]  ;;  %58 = vmatprep.subr.mxu1 %v33_v3  ;;  %v44_v7 = vld [vmem:[%s1410_s1 + $0x60] sm:$0xff]  ;;  %v50_v10 = vand.u32 127, %v49_v9  ;;  %v1353_v11 = vshrl.u32 %v49_v9, 7  ;;  %v34_v16 = vld [vmem:[%s1410_s1 + $0x10] sm:$0xff] }
  0x14   :  { %29 = vadd.xlane.f32.xlu0 %v28_v2  ;;  %484 = vmatprep.subr.mxu0 %v45_v4  ;;  %v37_v17 = vld [vmem:[%s1410_s1 + $0x28] sm:$0xff]  ;;  %v36_v18 = vld [vmem:[%s1410_s1 + $0x20] sm:$0xff]  ;;  %v39_v19 = vld [vmem:[%s1410_s1 + $0x38] sm:$0xff] }
  0x15   :  { %59 = vmatpush1.msra.mxu1 %v32_v5  ;;  %485 = vmatpush1.msra.mxu0 %v44_v7  ;;  %v53_v12 = vsub.s32 %v50_v10, %v1353_v11  ;;  %v38_v20 = vld [vmem:[%s1410_s1 + $0x30] sm:$0xff]  ;;  %v41_v21 = vld [vmem:[%s1410_s1 + $0x48] sm:$0xff]  ;;  %v40_v22 = vld [vmem:[%s1410_s1 + $0x40] sm:$0xff] }
  0x16   :  { %129 = vmatprep.subr.mxu1 %v35_v6  ;;  %v43_v23 = vld [vmem:[%s1410_s1 + $0x58] sm:$0xff]  ;;  %v42_v24 = vld [vmem:[%s1410_s1 + $0x50] sm:$0xff]  ;;  %v643_v27 = vld [vmem:[#allocation2 + $0x8] sm:$0xff] }
  0x17   :  { %v47_v25 = vld [vmem:[%s1410_s1 + $0x78] sm:$0xff]  ;;  %v46_v26 = vld [vmem:[%s1410_s1 + $0x70] sm:$0xff]  ;;  %v642_v28 = vld [vmem:[#allocation2] sm:$0xff] }
  0x18   :  { %v645_v29 = vld [vmem:[#allocation2 + $0x18] sm:$0xff]  ;;  %v644_v30 = vld [vmem:[#allocation2 + $0x10] sm:$0xff]  ;;  %v647_v31 = vld [vmem:[#allocation2 + $0x28] sm:$0xff] }
  0x19   :  { %728 = vmatprep.subr.mxu0 %v645_v29  ;;  %v646_v42 = vld [vmem:[#allocation2 + $0x20] sm:$0xff]  ;;  %v649_v44 = vld [vmem:[#allocation2 + $0x38] sm:$0xff]  ;;  %v648_v50 = vld [vmem:[#allocation2 + $0x30] sm:$0xff] }
  0x1a   :  { %v651_v53 = vld [vmem:[#allocation2 + $0x48] sm:$0xff]  ;;  %v650_v58 = vld [vmem:[#allocation2 + $0x40] sm:$0xff]  ;;  %v653_v61 = vld [vmem:[#allocation2 + $0x58] sm:$0xff] }
  0x1b   :  { %v652_v2 = vld [vmem:[#allocation2 + $0x50] sm:$0xff]  ;;  %v655_v4 = vld [vmem:[#allocation2 + $0x68] sm:$0xff]  ;;  %v654_v6 = vld [vmem:[#allocation2 + $0x60] sm:$0xff] }
  0x1c   :  { %v656_v10 = vld [vmem:[#allocation2 + $0x70] sm:$0xff] }
  0xa1   :  { %v30_v13 = vpop.xlane.xlu0 %29 }
  0xa2   :  { %v31_v14 = vmul.f32 0.00390625, %v30_v13 }
  0xa4   :  { %v54_v15 = vrot.slane %v31_v14, %v53_v12 }
  0xa6   :  { %1240 = vmatmul.mubr.msk.f32.vlgmr.msra.gmra.mrb[0].mxu1 %vm55_vm0, %v54_v15  ;;  %1246 = vmatmul.mubr.msk.f32.vlgmr.msra.gmra.mrb[0].mxu0 %vm55_vm0, %v54_v15 }
  0xa7   :  { %130 = vmatpush1.msra.mxu1 %v34_v16  ;;  %193 = vmatprep.mubr.f32.mxu1 %v1293_v8 }
  0xa8   :  { %200 = vmatprep.subr.mxu1 %v37_v17  ;;  %729 = vmatpush1.xpose.msra.mxu0 %v644_v30 }
  0xa9   :  { %798 = vmatprep.subr.mxu0 %v647_v31 }
  0xaa   :  { %1241 = vmatmul.mubr.msk.f32.vlgmr.msra.gmra.mrb[2].mxu1 %vm55_vm0, %v54_v15 }
  0xab   :  { %201 = vmatpush1.msra.mxu1 %v36_v18  ;;  %264 = vmatprep.mubr.f32.mxu1 %v1293_v8 }
  0xac   :  { %271 = vmatprep.subr.mxu1 %v39_v19 }
  0xae   :  { %1242 = vmatmul.mubr.msk.f32.vlgmr.msra.gmra.mrb[4].mxu1 %vm55_vm0, %v54_v15 }
  0xaf   :  { %272 = vmatpush1.msra.mxu1 %v38_v20  ;;  %335 = vmatprep.mubr.f32.mxu1 %v1293_v8 }
  0xb0   :  { %342 = vmatprep.subr.mxu1 %v41_v21 }
  0xb2   :  { %1243 = vmatmul.mubr.msk.f32.vlgmr.msra.gmra.mrb[6].mxu1 %vm55_vm0, %v54_v15 }
  0xb3   :  { %343 = vmatpush1.msra.mxu1 %v40_v22  ;;  %406 = vmatprep.mubr.f32.mxu1 %v1293_v8  ;;  %v1226_v22 = vsub.s32 0, %v1353_v11 }
  0xb4   :  { %413 = vmatprep.subr.mxu1 %v43_v23 }
  0xb6   :  { %1244 = vmatmul.mubr.msk.f32.vlgmr.msra.gmra.mrb[8].mxu1 %vm55_vm0, %v54_v15 }
  0xb7   :  { %414 = vmatpush1.msra.mxu1 %v42_v24  ;;  %477 = vmatprep.mubr.f32.mxu1 %v1293_v8 }
  0xb8   :  { %555 = vmatprep.subr.mxu1 %v47_v25 }
  0xba   :  { %1245 = vmatmul.mubr.msk.f32.vlgmr.msra.gmra.mrb[10].mxu1 %vm55_vm0, %v54_v15 }
  0xbb   :  { %556 = vmatpush1.msra.mxu1 %v46_v26  ;;  %619 = vmatprep.mubr.f32.mxu1 %v1293_v8  ;;  %v657_v8 = vld [vmem:[#allocation2 + $0x78] sm:$0xff] }
  0xbc   :  { %658 = vmatprep.subr.mxu1 %v643_v27 }
  0xbe   :  { %1247 = vmatmul.mubr.msk.f32.vlgmr.msra.gmra.mrb[12].mxu1 %vm55_vm0, %v54_v15 }
  0xc2   :  { %659 = vmatpush1.xpose.msra.mxu1 %v642_v28 }
 0x179   :  { %v124_v32 = vpop.f32.mrb[0].mxu1  ;;  %v1397_v33 = vpop.f32.mrb[0].mxu0 }
 0x17a   :  { %v126_v34 = vpop.f32.mrb[1].mxu1  ;;  %v552_v35 = vpop.f32.mrb[1].mxu0  ;;  %v626_v37 = vmax.f32 %v124_v32, 0.0  ;;  %v638_v9 = vmax.f32 %v1397_v33, 0.0 }
 0x17b   :  { %v627_v36 = vmax.f32 %v126_v34, 0.0  ;;  %v639_v7 = vmax.f32 %v552_v35, 0.0 }
 0x17d   :  { %v195_v38 = vpop.f32.mrb[2].mxu1  ;;  %722 = vmatprep.mubr.f32.mxu1 %v627_v36 }
 0x17e   :  { %v197_v39 = vpop.f32.mrb[3].mxu1  ;;  %723 = vmatmul.mubr.f32.vlgmr.msra.gmra.mrb[14].mxu1 %v626_v37  ;;  %v628_v41 = vmax.f32 %v195_v38, 0.0 }
 0x17f   :  { %v629_v40 = vmax.f32 %v197_v39, 0.0 }
 0x181   :  { %v266_v43 = vpop.f32.mrb[4].mxu1  ;;  %792 = vmatprep.mubr.f32.mxu0 %v629_v40 }
 0x182   :  { %v268_v45 = vpop.f32.mrb[5].mxu1  ;;  %793 = vmatmul.mubr.f32.vlgmr.msra.gmra.mrb[2].mxu0 %v628_v41  ;;  %v630_v49 = vmax.f32 %v266_v43, 0.0 }
 0x183   :  { %v631_v46 = vmax.f32 %v268_v45, 0.0  ;;  %799 = vmatpush1.xpose.msra.mxu0 %v646_v42 }
 0x184   :  { %868 = vmatprep.subr.mxu0 %v649_v44 }
 0x185   :  { %v337_v47 = vpop.f32.mrb[6].mxu1  ;;  %862 = vmatprep.mubr.f32.mxu0 %v631_v46 }
 0x186   :  { %v339_v48 = vpop.f32.mrb[7].mxu1  ;;  %v632_v57 = vmax.f32 %v337_v47, 0.0 }
 0x187   :  { %v633_v51 = vmax.f32 %v339_v48, 0.0 }
 0x189   :  { %v408_v52 = vpop.f32.mrb[8].mxu1 }
 0x18a   :  { %v410_v54 = vpop.f32.mrb[9].mxu1  ;;  %863 = vmatmul.mubr.f32.vlgmr.msra.gmra.mrb[2].mxu0 %v630_v49  ;;  %v634_v63 = vmax.f32 %v408_v52, 0.0 }
 0x18b   :  { %869 = vmatpush1.xpose.msra.mxu0 %v648_v50  ;;  %932 = vmatprep.mubr.f32.mxu0 %v633_v51  ;;  %v635_v59 = vmax.f32 %v410_v54, 0.0 }
 0x18c   :  { %938 = vmatprep.subr.mxu0 %v651_v53 }
 0x18d   :  { %v479_v55 = vpop.f32.mrb[10].mxu1 }
 0x18e   :  { %v481_v56 = vpop.f32.mrb[11].mxu1  ;;  %v636_v5 = vmax.f32 %v479_v55, 0.0 }
 0x18f   :  { %v637_v3 = vmax.f32 %v481_v56, 0.0 }
 0x191   :  { %v621_v60 = vpop.f32.mrb[12].mxu1 }
 0x192   :  { %v623_v62 = vpop.f32.mrb[13].mxu1  ;;  %933 = vmatmul.mubr.f32.vlgmr.msra.gmra.mrb[2].mxu0 %v632_v57  ;;  %v640_v13 = vmax.f32 %v621_v60, 0.0 }
 0x193   :  { %939 = vmatpush1.xpose.msra.mxu0 %v650_v58  ;;  %1002 = vmatprep.mubr.f32.mxu0 %v635_v59  ;;  %v641_v12 = vmax.f32 %v623_v62, 0.0 }
 0x194   :  { %1008 = vmatprep.subr.mxu0 %v653_v61 }
 0x19a   :  { %1003 = vmatmul.mubr.f32.vlgmr.msra.gmra.mrb[2].mxu0 %v634_v63 }
 0x19b   :  { %1009 = vmatpush1.xpose.msra.mxu0 %v652_v2  ;;  %1072 = vmatprep.mubr.f32.mxu0 %v637_v3 }
 0x19c   :  { %1078 = vmatprep.subr.mxu0 %v655_v4 }
 0x1a2   :  { %1073 = vmatmul.mubr.f32.vlgmr.msra.gmra.mrb[2].mxu0 %v636_v5 }
 0x1a3   :  { %1079 = vmatpush1.xpose.msra.mxu0 %v654_v6  ;;  %1142 = vmatprep.mubr.f32.mxu0 %v639_v7 }
 0x1a4   :  { %1148 = vmatprep.subr.mxu0 %v657_v8 }
 0x1aa   :  { %1143 = vmatmul.mubr.f32.vlgmr.msra.gmra.mrb[2].mxu0 %v638_v9 }
 0x1ab   :  { %1149 = vmatpush1.xpose.msra.mxu0 %v656_v10  ;;  %1212 = vmatprep.mubr.f32.mxu0 %v641_v12 }
 0x1b2   :  { %1213 = vmatmul.mubr.f32.vlgmr.msra.gmra.mrb[2].mxu0 %v640_v13 }
 0x251   :  { %v724_v14 = vpop.f32.mrb[14].mxu1 }
 0x252   :  { %v726_v15 = vpop.f32.mrb[15].mxu1 }
 0x285   :  { %v1214_v16 = vpop.f32.mrb[2].mxu0 }
 0x286   :  { %v1249_v17 = vadd.f32 %v1214_v16, %v724_v14  ;;  %v1216_v18 = vpop.f32.mrb[3].mxu0 }
 0x288   :  { %v1248_v19 = vmul.f32 -1.442695, %v1249_v17 }
 0x28a   :  { %1264 = vpow2.f32 %v1248_v19 }
 0x294   :  { %v1265_v20 = vpop.eup %1264 }
 0x295   :  { %v1221_v21 = vadd.f32 1.0, %v1265_v20 }
 0x297   :  { %1266 = vrcp.f32 %v1221_v21 }
 0x2a1   :  { %v1267_v23 = vpop.eup %1266 }
 0x2a2   :  { %v1227_v24 = vrot.slane %v1267_v23, %v1226_v22 }
 0x2a4   :  { %1229 = vbcast.lane.b32.xlu0 %v1227_v24, 256 }
 0x316   :  { %v1230_v25 = vpop.permute.xlu0 %1229 }
 0x317   :  { %v1231_v26 = vmul.f32 %v1230_v25, %v1329_v0  ;;  %v1232_v27 = vmul.f32 %v1230_v25, %v1334_v1 }
 0x319   :  { %1233 = vst [vmem:[%s1412_s3] sm:$0xff] %v1231_v26  ;;  %1234 = vst [vmem:[%s1412_s3 + $0x8] sm:$0xff] %v1232_v27 }
 0x31a   :  { %1239 = vsyncpa [#allocation3], 1 }

</bundles_post_ra>
